<compile_context>
chip_gen: v7x
topology: tpu7x:2x2x1
jax: 0.10.0
libtpu: 0.0.40
codegen_flags: <defaults>
</compile_context>

<pallas_src>
import jax
import jax.numpy as jnp
from jax import lax
from jax.experimental import pallas as pl
from jax.experimental.pallas import tpu as pltpu

NUM_PILES = 4
MAX_PILE_SIZE = 7
INPUT_SIZE = NUM_PILES * (MAX_PILE_SIZE + 1)      # 32
HIDDEN1 = 128
HIDDEN2 = 64
POLICY_SIZE = NUM_PILES * MAX_PILE_SIZE           # 28
VALUE_HIDDEN = 32

OUT_WIDTH = 32        # lane-compact output: cols 0..27 policy, col 28 value, 29..31 pad
NEG_BIG = -1e30       # "-inf" baked into the padded policy-bias columns


def _cdiv(a, b):
    return (a + b - 1) // b


def _round_up(n, m):
    return _cdiv(n, m) * m


def alphazero_kernel(x_ref,
                     w1_ref, b1_ref,
                     w2_ref, b2_ref,
                     wp_ref, bp_ref,
                     wv1_ref, bv1_ref,
                     wv2_ref, bv2_ref,
                     out_ref):
    mxu_dt = w1_ref.dtype                       # f32 (exact-ish) or bf16 (fast MXU path)

    # shared trunk
    x = x_ref[...].astype(mxu_dt)                                           # (TB, 32)
    h1 = jnp.dot(x, w1_ref[...], preferred_element_type=jnp.float32) + b1_ref[...]
    h1 = jnp.maximum(h1, 0.0)                                               # (TB, 128)
    h2 = jnp.dot(h1.astype(mxu_dt), w2_ref[...],
                 preferred_element_type=jnp.float32) + b2_ref[...]
    h2 = jnp.maximum(h2, 0.0)                                               # (TB, 64), no lane padding
    h2m = h2.astype(mxu_dt)

    # policy head (32-wide: cols 0..27 real, 28..31 have bias=-1e30 -> exp()=0, no mask needed)
    logits = jnp.dot(h2m, wp_ref[...],
                     preferred_element_type=jnp.float32) + bp_ref[...]      # (TB, 32)
    m = jnp.max(logits, axis=1, keepdims=True)
    e = jnp.exp(logits - m)                                                 # pad cols -> 0
    denom = jnp.sum(e, axis=1, keepdims=True)
    policy = e * pl.reciprocal(denom, approx=True)                          # (TB, 32)

    # value head: (TB,64)@(64,32) -> ReLU -> lane-reduce against wv2 row -> tanh
    vh = jnp.dot(h2m, wv1_ref[...],
                 preferred_element_type=jnp.float32) + bv1_ref[...]         # (TB, 32)
    vh = jnp.maximum(vh, 0.0)
    v = jnp.sum(vh * wv2_ref[...], axis=1, keepdims=True) + bv2_ref[...]
    value = jnp.tanh(v)                                                     # (TB, 1)

    # compact store: policy in cols 0..27, value in col 28, zeros in 29..31
    col = lax.broadcasted_iota(jnp.int32, (1, OUT_WIDTH), 1)                # (1, 32), broadcast over TB
    out_ref[...] = jnp.where(col == POLICY_SIZE, value, policy)


def pack_params(p, mxu_dtype=jnp.float32):
    """Pack natural (in,out)-layout params into kernel layout.

    Matmul weights are stored in `mxu_dtype` (halves weight DMA for bf16);
    biases and the value-output row stay f32 (added after f32 accumulation).
    """
    wdt = mxu_dtype
    w1 = p["w1"].astype(wdt)                                   # (32, 128)
    b1 = p["b1"]                                               # (1, 128)
    w2 = p["w2"].astype(wdt)                                   # (128, 64) -- NOT lane-padded
    b2 = p["b2"]                                               # (1, 64)

    wp32 = jnp.zeros((HIDDEN2, OUT_WIDTH), wdt).at[:, :POLICY_SIZE].set(p["wp"].astype(wdt))
    bp32 = jnp.full((1, OUT_WIDTH), NEG_BIG, jnp.float32).at[:, :POLICY_SIZE].set(p["bp"])

    wv1 = p["wv1"].astype(wdt)                                 # (64, 32)
    bv1 = p["bv1"]                                             # (1, 32)
    wv2_row = p["wv2"].reshape(1, VALUE_HIDDEN)                # (1, 32)
    bv2 = p["bv2"].reshape(1, 1)                               # (1, 1)

    return (w1, b1, w2, b2, wp32, bp32, wv1, bv1, wv2_row, bv2)


def alphazero_forward(x, params, *, tile_b=4096, mxu_dtype=jnp.float32):
    """x: (B, 32) float32. Returns (policy (B,28) softmaxed, value (B,1)).

    mxu_dtype=jnp.bfloat16 runs the matmuls bf16-in / f32-accumulate
    (recommended on v5e / v7x, where the f32 MXU path is multi-pass).
    """
    B = x.shape[0]

    # Choose the batch tile so padded_B tracks B (no large padding waste).
    if B <= tile_b:
        tb = _round_up(B, 8)
    else:
        n_tiles = _cdiv(B, tile_b)
        tb = _round_up(_cdiv(B, n_tiles), 8)
    padded_B = _round_up(B, tb)
    if padded_B != B:
        x = jnp.pad(x, ((0, padded_B - B), (0, 0)))

    packed = pack_params(params, mxu_dtype)
    grid = (padded_B // tb,)

    const_map = lambda i: (0, 0)
    in_specs = [pl.BlockSpec((tb, INPUT_SIZE), lambda i: (i, 0))]     # x: streamed per step
    in_specs += [pl.BlockSpec(w.shape, const_map) for w in packed]    # weights: resident
    out_specs = pl.BlockSpec((tb, OUT_WIDTH), lambda i: (i, 0))

    out = pl.pallas_call(
        alphazero_kernel,
        out_shape=jax.ShapeDtypeStruct((padded_B, OUT_WIDTH), jnp.float32),
        grid=grid,
        in_specs=in_specs,
        out_specs=out_specs,
        compiler_params=pltpu.CompilerParams(
            dimension_semantics=("parallel",)),
    )(x, *packed)

    policy = out[:B, :POLICY_SIZE]
    value = out[:B, POLICY_SIZE:POLICY_SIZE + 1]
    return policy, value


def init_params(key):
    """Deterministic synthetic parameters. Weights stored as (in, out);
    biases stored as (1, out)."""
    ks = jax.random.split(key, 10)

    def lin(kw, kb, fan_in, fan_out):
        bound = 1.0 / jnp.sqrt(jnp.float32(fan_in))
        w = jax.random.uniform(kw, (fan_in, fan_out), jnp.float32, -bound, bound)
        b = jax.random.uniform(kb, (1, fan_out), jnp.float32, -bound, bound)
        return w, b

    w1, b1 = lin(ks[0], ks[1], INPUT_SIZE, HIDDEN1)
    w2, b2 = lin(ks[2], ks[3], HIDDEN1, HIDDEN2)
    wp, bp = lin(ks[4], ks[5], HIDDEN2, POLICY_SIZE)
    wv1, bv1 = lin(ks[6], ks[7], HIDDEN2, VALUE_HIDDEN)
    wv2, bv2 = lin(ks[8], ks[9], VALUE_HIDDEN, 1)
    return dict(w1=w1, b1=b1, w2=w2, b2=b2, wp=wp, bp=bp,
                wv1=wv1, bv1=bv1, wv2=wv2, bv2=bv2)


def reference_forward(x, p):
    h1 = jnp.maximum(x @ p["w1"] + p["b1"], 0.0)
    h2 = jnp.maximum(h1 @ p["w2"] + p["b2"], 0.0)
    logits = h2 @ p["wp"] + p["bp"]
    policy = jax.nn.softmax(logits, axis=1)
    hv = jnp.maximum(h2 @ p["wv1"] + p["bv1"], 0.0)
    value = jnp.tanh(hv @ p["wv2"] + p["bv2"])
    return policy, value


def _check(x, params, *, mxu_dtype=jnp.float32, p_tol=2e-3, v_tol=5e-4):
    policy, value = alphazero_forward(x, params, mxu_dtype=mxu_dtype)
    policy = jax.block_until_ready(policy)
    value = jax.block_until_ready(value)
    ref_policy, ref_value = reference_forward(x, params)
    assert policy.shape == ref_policy.shape and value.shape == ref_value.shape
    assert bool(jnp.all(jnp.isfinite(policy))) and bool(jnp.all(jnp.isfinite(value)))
    assert jnp.allclose(policy, ref_policy, atol=p_tol, rtol=p_tol), "policy mismatch"
    assert jnp.allclose(value, ref_value, atol=v_tol, rtol=v_tol), "value mismatch"
    assert jnp.allclose(jnp.sum(policy, axis=1), 1.0, atol=5e-3), "policy rows must sum to 1"


if __name__ == "__main__":
    key = jax.random.PRNGKey(0)
    k_params, k_x1, k_x2 = jax.random.split(key, 3)

    params = init_params(k_params)

    # small latency-style batch (B=2 encoded Nim states)
    x_small = jax.random.uniform(k_x1, (2, INPUT_SIZE), jnp.float32)
    # larger ragged batch to exercise the batch tiling / padding path
    x_big = jax.random.uniform(k_x2, (600, INPUT_SIZE), jnp.float32)

    # f32 MXU-operand path (matches PyTorch f32 semantics up to TPU default matmul precision
    # and the approx reciprocal in the softmax)
    _check(x_small, params)
    _check(x_big, params)

    # bf16-at-the-MXU opt-in (recommended on v5e / v7x); relaxed tolerances vs the f32 reference
    _check(x_small, params, mxu_dtype=jnp.bfloat16, p_tol=5e-2, v_tol=5e-2)
    _check(x_big, params, mxu_dtype=jnp.bfloat16, p_tol=5e-2, v_tol=5e-2)

    print("KERNEL_OK")
</pallas_src>

<mosaic_0001>
module attributes {stable_mosaic.version = 11 : i64} {
  func.func @alphazero_kernel(%arg0: i32, %arg1: memref<8x32xf32, #tpu.memory_space<vmem>>, %arg2: memref<32x128xf32, #tpu.memory_space<vmem>>, %arg3: memref<1x128xf32, #tpu.memory_space<vmem>>, %arg4: memref<128x64xf32, #tpu.memory_space<vmem>>, %arg5: memref<1x64xf32, #tpu.memory_space<vmem>>, %arg6: memref<64x32xf32, #tpu.memory_space<vmem>>, %arg7: memref<1x32xf32, #tpu.memory_space<vmem>>, %arg8: memref<64x32xf32, #tpu.memory_space<vmem>>, %arg9: memref<1x32xf32, #tpu.memory_space<vmem>>, %arg10: memref<1x32xf32, #tpu.memory_space<vmem>>, %arg11: memref<1x1xf32, #tpu.memory_space<vmem>>, %arg12: memref<8x32xf32, #tpu.memory_space<vmem>>) attributes {dimension_semantics = [#tpu.dimension_semantics<parallel>], iteration_bounds = array<i64: 1>, scalar_prefetch = 0 : i64, scratch_operands = 0 : i64, tpu.core_type = #tpu.core_type<tc>, window_params = [{transform_indices = @transform_0, window_bounds = array<i64: 8, 32>}, {pipeline_mode = #tpu.pipeline_mode<synchronous>, transform_indices = @transform_1, window_bounds = array<i64: 32, 128>}, {pipeline_mode = #tpu.pipeline_mode<synchronous>, transform_indices = @transform_2, window_bounds = array<i64: 1, 128>}, {pipeline_mode = #tpu.pipeline_mode<synchronous>, transform_indices = @transform_3, window_bounds = array<i64: 128, 64>}, {pipeline_mode = #tpu.pipeline_mode<synchronous>, transform_indices = @transform_4, window_bounds = array<i64: 1, 64>}, {pipeline_mode = #tpu.pipeline_mode<synchronous>, transform_indices = @transform_5, window_bounds = array<i64: 64, 32>}, {pipeline_mode = #tpu.pipeline_mode<synchronous>, transform_indices = @transform_6, window_bounds = array<i64: 1, 32>}, {pipeline_mode = #tpu.pipeline_mode<synchronous>, transform_indices = @transform_7, window_bounds = array<i64: 64, 32>}, {pipeline_mode = #tpu.pipeline_mode<synchronous>, transform_indices = @transform_8, window_bounds = array<i64: 1, 32>}, {pipeline_mode = #tpu.pipeline_mode<synchronous>, transform_indices = @transform_9, window_bounds = array<i64: 1, 32>}, {pipeline_mode = #tpu.pipeline_mode<synchronous>, transform_indices = @transform_10, window_bounds = array<i64: 1, 1>}, {transform_indices = @transform_11, window_bounds = array<i64: 8, 32>}]} {
    %c0 = arith.constant 0 : index
    %c0_0 = arith.constant 0 : index
    %0 = vector.load %arg1[%c0, %c0_0] : memref<8x32xf32, #tpu.memory_space<vmem>>, vector<8x32xf32>
    %c0_1 = arith.constant 0 : index
    %c0_2 = arith.constant 0 : index
    %1 = vector.load %arg2[%c0_1, %c0_2] : memref<32x128xf32, #tpu.memory_space<vmem>>, vector<32x128xf32>
    %cst = arith.constant dense<0.000000e+00> : vector<8x128xf32>
    %2 = tpu.matmul %0, %1, %cst {dimension_numbers = #tpu.dot_dimension_numbers<[1], [0], [0], [1], [0, 0, 1, 1], [], []>} : vector<8x32xf32>, vector<32x128xf32>, vector<8x128xf32> -> vector<8x128xf32>
    %c0_3 = arith.constant 0 : index
    %c0_4 = arith.constant 0 : index
    %3 = vector.load %arg3[%c0_3, %c0_4] : memref<1x128xf32, #tpu.memory_space<vmem>>, vector<1x128xf32>
    %4 = vector.broadcast %3 : vector<1x128xf32> to vector<8x128xf32>
    %5 = arith.addf %2, %4 : vector<8x128xf32>
    %cst_5 = arith.constant 0.000000e+00 : f32
    %6 = vector.broadcast %cst_5 : f32 to vector<8x128xf32>
    %7 = arith.maximumf %5, %6 : vector<8x128xf32>
    %c0_6 = arith.constant 0 : index
    %c0_7 = arith.constant 0 : index
    %8 = vector.load %arg4[%c0_6, %c0_7] : memref<128x64xf32, #tpu.memory_space<vmem>>, vector<128x64xf32>
    %cst_8 = arith.constant dense<0.000000e+00> : vector<8x64xf32>
    %9 = tpu.matmul %7, %8, %cst_8 {dimension_numbers = #tpu.dot_dimension_numbers<[1], [0], [0], [1], [0, 0, 1, 1], [], []>} : vector<8x128xf32>, vector<128x64xf32>, vector<8x64xf32> -> vector<8x64xf32>
    %c0_9 = arith.constant 0 : index
    %c0_10 = arith.constant 0 : index
    %10 = vector.load %arg5[%c0_9, %c0_10] : memref<1x64xf32, #tpu.memory_space<vmem>>, vector<1x64xf32>
    %11 = vector.broadcast %10 : vector<1x64xf32> to vector<8x64xf32>
    %12 = arith.addf %9, %11 : vector<8x64xf32>
    %cst_11 = arith.constant 0.000000e+00 : f32
    %13 = vector.broadcast %cst_11 : f32 to vector<8x64xf32>
    %14 = arith.maximumf %12, %13 : vector<8x64xf32>
    %c0_12 = arith.constant 0 : index
    %c0_13 = arith.constant 0 : index
    %15 = vector.load %arg6[%c0_12, %c0_13] : memref<64x32xf32, #tpu.memory_space<vmem>>, vector<64x32xf32>
    %cst_14 = arith.constant dense<0.000000e+00> : vector<8x32xf32>
    %16 = tpu.matmul %14, %15, %cst_14 {dimension_numbers = #tpu.dot_dimension_numbers<[1], [0], [0], [1], [0, 0, 1, 1], [], []>} : vector<8x64xf32>, vector<64x32xf32>, vector<8x32xf32> -> vector<8x32xf32>
    %c0_15 = arith.constant 0 : index
    %c0_16 = arith.constant 0 : index
    %17 = vector.load %arg7[%c0_15, %c0_16] : memref<1x32xf32, #tpu.memory_space<vmem>>, vector<1x32xf32>
    %18 = vector.broadcast %17 : vector<1x32xf32> to vector<8x32xf32>
    %19 = arith.addf %16, %18 : vector<8x32xf32>
    %cst_17 = arith.constant dense<0xFF800000> : vector<8xf32>
    %20 = vector.multi_reduction <maximumf>, %19, %cst_17 [1] : vector<8x32xf32> to vector<8xf32>
    %21 = vector.shape_cast %20 : vector<8xf32> to vector<8x1xf32>
    %22 = vector.broadcast %21 : vector<8x1xf32> to vector<8x32xf32>
    %23 = arith.subf %19, %22 : vector<8x32xf32>
    %24 = math.exp %23 : vector<8x32xf32>
    %cst_18 = arith.constant dense<0.000000e+00> : vector<8xf32>
    %25 = vector.multi_reduction <add>, %24, %cst_18 [1] : vector<8x32xf32> to vector<8xf32>
    %26 = vector.shape_cast %25 : vector<8xf32> to vector<8x1xf32>
    %27 = tpu.reciprocal %26 {approx = true} : vector<8x1xf32> -> vector<8x1xf32>
    %28 = vector.broadcast %27 : vector<8x1xf32> to vector<8x32xf32>
    %29 = arith.mulf %24, %28 : vector<8x32xf32>
    %c0_19 = arith.constant 0 : index
    %c0_20 = arith.constant 0 : index
    %30 = vector.load %arg8[%c0_19, %c0_20] : memref<64x32xf32, #tpu.memory_space<vmem>>, vector<64x32xf32>
    %cst_21 = arith.constant dense<0.000000e+00> : vector<8x32xf32>
    %31 = tpu.matmul %14, %30, %cst_21 {dimension_numbers = #tpu.dot_dimension_numbers<[1], [0], [0], [1], [0, 0, 1, 1], [], []>} : vector<8x64xf32>, vector<64x32xf32>, vector<8x32xf32> -> vector<8x32xf32>
    %c0_22 = arith.constant 0 : index
    %c0_23 = arith.constant 0 : index
    %32 = vector.load %arg9[%c0_22, %c0_23] : memref<1x32xf32, #tpu.memory_space<vmem>>, vector<1x32xf32>
    %33 = vector.broadcast %32 : vector<1x32xf32> to vector<8x32xf32>
    %34 = arith.addf %31, %33 : vector<8x32xf32>
    %cst_24 = arith.constant 0.000000e+00 : f32
    %35 = vector.broadcast %cst_24 : f32 to vector<8x32xf32>
    %36 = arith.maximumf %34, %35 : vector<8x32xf32>
    %c0_25 = arith.constant 0 : index
    %c0_26 = arith.constant 0 : index
    %37 = vector.load %arg10[%c0_25, %c0_26] : memref<1x32xf32, #tpu.memory_space<vmem>>, vector<1x32xf32>
    %38 = vector.broadcast %37 : vector<1x32xf32> to vector<8x32xf32>
    %39 = arith.mulf %36, %38 : vector<8x32xf32>
    %cst_27 = arith.constant dense<0.000000e+00> : vector<8xf32>
    %40 = vector.multi_reduction <add>, %39, %cst_27 [1] : vector<8x32xf32> to vector<8xf32>
    %41 = vector.shape_cast %40 : vector<8xf32> to vector<8x1xf32>
    %c0_28 = arith.constant 0 : index
    %c0_29 = arith.constant 0 : index
    %42 = vector.load %arg11[%c0_28, %c0_29] : memref<1x1xf32, #tpu.memory_space<vmem>>, vector<1x1xf32>
    %43 = vector.broadcast %42 : vector<1x1xf32> to vector<8x1xf32>
    %44 = arith.addf %41, %43 : vector<8x1xf32>
    %45 = math.tanh %44 : vector<8x1xf32>
    %46 = tpu.iota {dimensions = array<i32: 1>} : vector<1x32xi32>
    %c28_i32 = arith.constant 28 : i32
    %47 = vector.broadcast %c28_i32 : i32 to vector<1x32xi32>
    %48 = arith.cmpi eq, %46, %47 : vector<1x32xi32>
    %49 = vector.shape_cast %48 : vector<1x32xi1> to vector<1x32xi1>
    %50 = vector.broadcast %49 : vector<1x32xi1> to vector<8x32xi1>
    %51 = vector.shape_cast %45 : vector<8x1xf32> to vector<8x1xf32>
    %52 = vector.broadcast %51 : vector<8x1xf32> to vector<8x32xf32>
    %53 = arith.select %50, %52, %29 : vector<8x32xi1>, vector<8x32xf32>
    %c0_30 = arith.constant 0 : index
    %c0_31 = arith.constant 0 : index
    %54 = vector.load %arg12[%c0_30, %c0_31] : memref<8x32xf32, #tpu.memory_space<vmem>>, vector<8x32xf32>
    tpu.vector_store %arg12[%c0_30, %c0_31], %53 {strides = array<i32>} : memref<8x32xf32, #tpu.memory_space<vmem>>, vector<8x32xf32>,
    return
  }
  func.func @transform_0(%arg0: i32) -> (i32, i32) {
    %c0_i32 = arith.constant 0 : i32
    %c0_i32_0 = arith.constant 0 : i32
    return %arg0, %c0_i32 : i32, i32
  }
  func.func @transform_1(%arg0: i32) -> (i32, i32) {
    %c0_i32 = arith.constant 0 : i32
    %c0_i32_0 = arith.constant 0 : i32
    %c0_i32_1 = arith.constant 0 : i32
    return %c0_i32, %c0_i32_0 : i32, i32
  }
  func.func @transform_2(%arg0: i32) -> (i32, i32) {
    %c0_i32 = arith.constant 0 : i32
    %c0_i32_0 = arith.constant 0 : i32
    %c0_i32_1 = arith.constant 0 : i32
    return %c0_i32, %c0_i32_0 : i32, i32
  }
  func.func @transform_3(%arg0: i32) -> (i32, i32) {
    %c0_i32 = arith.constant 0 : i32
    %c0_i32_0 = arith.constant 0 : i32
    %c0_i32_1 = arith.constant 0 : i32
    return %c0_i32, %c0_i32_0 : i32, i32
  }
  func.func @transform_4(%arg0: i32) -> (i32, i32) {
    %c0_i32 = arith.constant 0 : i32
    %c0_i32_0 = arith.constant 0 : i32
    %c0_i32_1 = arith.constant 0 : i32
    return %c0_i32, %c0_i32_0 : i32, i32
  }
  func.func @transform_5(%arg0: i32) -> (i32, i32) {
    %c0_i32 = arith.constant 0 : i32
    %c0_i32_0 = arith.constant 0 : i32
    %c0_i32_1 = arith.constant 0 : i32
    return %c0_i32, %c0_i32_0 : i32, i32
  }
  func.func @transform_6(%arg0: i32) -> (i32, i32) {
    %c0_i32 = arith.constant 0 : i32
    %c0_i32_0 = arith.constant 0 : i32
    %c0_i32_1 = arith.constant 0 : i32
    return %c0_i32, %c0_i32_0 : i32, i32
  }
  func.func @transform_7(%arg0: i32) -> (i32, i32) {
    %c0_i32 = arith.constant 0 : i32
    %c0_i32_0 = arith.constant 0 : i32
    %c0_i32_1 = arith.constant 0 : i32
    return %c0_i32, %c0_i32_0 : i32, i32
  }
  func.func @transform_8(%arg0: i32) -> (i32, i32) {
    %c0_i32 = arith.constant 0 : i32
    %c0_i32_0 = arith.constant 0 : i32
    %c0_i32_1 = arith.constant 0 : i32
    return %c0_i32, %c0_i32_0 : i32, i32
  }
  func.func @transform_9(%arg0: i32) -> (i32, i32) {
    %c0_i32 = arith.constant 0 : i32
    %c0_i32_0 = arith.constant 0 : i32
    %c0_i32_1 = arith.constant 0 : i32
    return %c0_i32, %c0_i32_0 : i32, i32
  }
  func.func @transform_10(%arg0: i32) -> (i32, i32) {
    %c0_i32 = arith.constant 0 : i32
    %c0_i32_0 = arith.constant 0 : i32
    %c0_i32_1 = arith.constant 0 : i32
    return %c0_i32, %c0_i32_0 : i32, i32
  }
  func.func @transform_11(%arg0: i32) -> (i32, i32) {
    %c0_i32 = arith.constant 0 : i32
    %c0_i32_0 = arith.constant 0 : i32
    return %arg0, %c0_i32 : i32, i32
  }
}

</mosaic_0001>

<bundles_post_ra>
// kernel: tpu_custom_call.1
= control target key start
LH: loop header
LB: loop body
LE: loop exit
PB: predicated region body
PF: predicated region fallthrough
CT: control target
= control target key end

     0   :  { %s917_s0 = inlined_call_operand.vmem [shape: f32[8,32], index: 0, kind: input, shape index: {}]   ;;  %s918_s1 = inlined_call_operand.vmem [shape: f32[32,128], index: 1, kind: input, shape index: {}]   ;;  %s919_s2 = inlined_call_operand.vmem [shape: f32[1,128], index: 2, kind: input, shape index: {}]   ;;  %s920_s3 = inlined_call_operand.vmem [shape: f32[128,64], index: 3, kind: input, shape index: {}]   ;;  %s921_s4 = inlined_call_operand.vmem [shape: f32[1,64], index: 4, kind: input, shape index: {}]   ;;  %s922_s5 = inlined_call_operand.vmem [shape: f32[64,32], index: 5, kind: input, shape index: {}]   ;;  %s923_s6 = inlined_call_operand.vmem [shape: f32[1,32], index: 6, kind: input, shape index: {}]   ;;  %s924_s7 = inlined_call_operand.vmem [shape: f32[64,32], index: 7, kind: input, shape index: {}]   ;;  %s925_s8 = inlined_call_operand.vmem [shape: f32[1,32], index: 8, kind: input, shape index: {}]   ;;  %s926_s9 = inlined_call_operand.vmem [shape: f32[1,32], index: 9, kind: input, shape index: {}]   ;;  %s927_s10 = inlined_call_operand.<no memory space> [shape: f32[1,1], index: 10, kind: input, shape index: {}]   ;;  %s928_s11 = inlined_call_operand.hbm [shape: f32[8,32], index: 11, kind: output, shape index: {}]  }
   0x1   :  { %v16_v0 = vstv %s927_s10 }
   0x2   :  { %17 = vst [vmem:[#allocation2] sm:$0x1] %v16_v0 }
   0x3   :  { %v42_v1 = vld [vmem:[%s918_s1] sm:$0xff]  ;;  %v43_v2 = vld [vmem:[%s918_s1 + $0x8] sm:$0xff]  ;;  %v44_v3 = vld [vmem:[%s918_s1 + $0x10] sm:$0xff]  ;;  %v678_v4 = vmov 0.0|0.0   ;;  %vm679_vm0 = vmmov 0   ;;  %v680_v7 = vmov 0.0  }
   0x4   :  { %587 = vmatprep.subr.bf16.mxu0 %v678_v4  ;;  %v588_v5 = vpack.c.bf16 %v43_v2, %v42_v1  ;;  %v45_v6 = vld [vmem:[%s918_s1 + $0x18] sm:$0xff]  ;;  %511 = vmatprep.mubr.msk.f32.mxu0 %vm679_vm0, %v680_v7  ;;  %v128_v8 = vld [vmem:[%s920_s3] sm:$0xff]  ;;  %v129_v9 = vld [vmem:[%s920_s3 + $0x8] sm:$0xff] }
   0x5   :  { %593 = vmatprep.subr.bf16.mxu1 %v678_v4  ;;  %v130_v10 = vld [vmem:[%s920_s3 + $0x10] sm:$0xff]  ;;  %v131_v11 = vld [vmem:[%s920_s3 + $0x18] sm:$0xff]  ;;  %546 = vmatprep.mubr.msk.f32.mxu1 %vm679_vm0, %v680_v7  ;;  %v591_v12 = vpack.c.bf16 %v45_v6, %v44_v3  ;;  %v594_v13 = vpack.c.bf16 %v129_v9, %v128_v8  ;;  %v132_v15 = vld [vmem:[%s920_s3 + $0x20] sm:$0xff] }
   0x6   :  { %589 = vmatpush3.bf16.msra.mxu0 %v588_v5  ;;  %v597_v14 = vpack.c.bf16 %v131_v11, %v130_v10  ;;  %v133_v16 = vld [vmem:[%s920_s3 + $0x28] sm:$0xff] }
   0x7   :  { %590 = vmatprep.subr.bf16.mxu0 %v678_v4  ;;  %595 = vmatpush3.bf16.msra.mxu1 %v594_v13 }
   0x8   :  { %596 = vmatprep.subr.bf16.mxu1 %v678_v4 }
   0x9   :  { %18 = vsyncpa [#allocation4], 0  ;;  %v41_v17 = vld [vmem:[%s917_s0] sm:$0xff]  ;;  %vm53_vm1 = vcmask 261120   ;;  %v600_v18 = vpack.c.bf16 %v133_v16, %v132_v15  ;;  %v134_v19 = vld [vmem:[%s920_s3 + $0x30] sm:$0xff]  ;;  %vm237_vm2 = vcmask 523264  }
   0xa   :  { %592 = vmatpush3.bf16.msra.mxu0 %v591_v12  ;;  %v135_v20 = vld [vmem:[%s920_s3 + $0x38] sm:$0xff]  ;;  %v136_v22 = vld [vmem:[%s920_s3 + $0x40] sm:$0xff]  ;;  %v137_v23 = vld [vmem:[%s920_s3 + $0x48] sm:$0xff] }
   0xb   :  { %617 = vmatprep.subr.bf16.mxu0 %v678_v4  ;;  %598 = vmatpush3.bf16.msra.mxu1 %v597_v14  ;;  %v603_v21 = vpack.c.bf16 %v135_v20, %v134_v19  ;;  %v606_v24 = vpack.c.bf16 %v137_v23, %v136_v22  ;;  %v138_v25 = vld [vmem:[%s920_s3 + $0x50] sm:$0xff]  ;;  %v139_v26 = vld [vmem:[%s920_s3 + $0x58] sm:$0xff]  ;;  %v140_v28 = vld [vmem:[%s920_s3 + $0x60] sm:$0xff] }
   0xc   :  { %599 = vmatprep.subr.bf16.mxu1 %v678_v4  ;;  %v609_v27 = vpack.c.bf16 %v139_v26, %v138_v25  ;;  %v141_v29 = vld [vmem:[%s920_s3 + $0x68] sm:$0xff]  ;;  %v142_v31 = vld [vmem:[%s920_s3 + $0x70] sm:$0xff]  ;;  %v143_v32 = vld [vmem:[%s920_s3 + $0x78] sm:$0xff] }
   0xd   :  { %512 = vmatmul.mubr.msk.f32.vlgmr.msra.gmra.mrb[0].mxu0 %vm53_vm1, %v41_v17  ;;  %v612_v30 = vpack.c.bf16 %v141_v29, %v140_v28  ;;  %v615_v33 = vpack.c.bf16 %v143_v32, %v142_v31  ;;  %v222_v34 = vld [vmem:[%s922_s5] sm:$0xff]  ;;  %v223_v35 = vld [vmem:[%s922_s5 + $0x8] sm:$0xff]  ;;  %v224_v36 = vld [vmem:[%s922_s5 + $0x10] sm:$0xff]  ;;  %v681_v17 = vmov 0   ;;  %v428_v28 = vlaneseq }
   0xe   :  { %565 = vmatprep.mubr.msk.f32.mxu0 %vm679_vm0, %v680_v7  ;;  %v618_v37 = vpack.c.bf16 %v223_v35, %v222_v34  ;;  %v225_v38 = vld [vmem:[%s922_s5 + $0x18] sm:$0xff]  ;;  %v226_v40 = vld [vmem:[%s922_s5 + $0x20] sm:$0xff]  ;;  %v227_v41 = vld [vmem:[%s922_s5 + $0x28] sm:$0xff]  ;;  %646 = vset.pattern.permute.xlu1 %v681_v17 }
   0xf   :  { %601 = vmatpush3.bf16.msra.mxu1 %v600_v18  ;;  %v621_v39 = vpack.c.bf16 %v225_v38, %v224_v36  ;;  %v624_v42 = vpack.c.bf16 %v227_v41, %v226_v40  ;;  %v454_v43 = vld [vmem:[%s919_s2] ss:$0 sm:$0xff]  ;;  %v228_v48 = vld [vmem:[%s922_s5 + $0x30] sm:$0xff]  ;;  %v229_v49 = vld [vmem:[%s922_s5 + $0x38] sm:$0xff]  ;;  %647 = vset.pattern.permute.xlu0 %v681_v17  ;;  %v429_v29 = vand.u32 127, %v428_v28 }
  0x10   :  { %602 = vmatprep.subr.bf16.mxu1 %v678_v4  ;;  %619 = vmatpush3.bf16.msra.mxu0 %v618_v37  ;;  %v627_v50 = vpack.c.bf16 %v229_v49, %v228_v48  ;;  %v456_v51 = vld [vmem:[%s921_s4] ss:$0 sm:$0xff]  ;;  %v323_v53 = vld [vmem:[%s924_s7 + $0x8] sm:$0xff]  ;;  %v324_v59 = vld [vmem:[%s924_s7 + $0x10] sm:$0xff] }
  0x11   :  { %620 = vmatprep.subr.bf16.mxu0 %v678_v4  ;;  %v322_v52 = vld [vmem:[%s924_s7] sm:$0xff]  ;;  %v325_v60 = vld [vmem:[%s924_s7 + $0x18] sm:$0xff]  ;;  %v327_v63 = vld [vmem:[%s924_s7 + $0x28] sm:$0xff]  ;;  %vm430_vm3 = vcmp.eq.s32.totalorder %v429_v29, 28 }
  0x12   :  { %v630_v57 = vpack.c.bf16 %v323_v53, %v322_v52  ;;  %v633_v61 = vpack.c.bf16 %v325_v60, %v324_v59  ;;  %v326_v62 = vld [vmem:[%s924_s7 + $0x20] sm:$0xff]  ;;  %v328_v1 = vld [vmem:[%s924_s7 + $0x30] sm:$0xff]  ;;  %v329_v2 = vld [vmem:[%s924_s7 + $0x38] sm:$0xff] }
  0x13   :  { %604 = vmatpush3.bf16.msra.mxu1 %v603_v21  ;;  %v636_v0 = vpack.c.bf16 %v327_v63, %v326_v62  ;;  %v639_v3 = vpack.c.bf16 %v329_v2, %v328_v1  ;;  %v457_v5 = vld [vmem:[%s923_s6] ss:$0 sm:$0xff]  ;;  %s682_s6 = smov [#allocation3]  }
  0x14   :  { %605 = vmatprep.subr.bf16.mxu1 %v678_v4  ;;  %622 = vmatpush3.bf16.msra.mxu0 %v621_v39  ;;  %v459_v10 = vld [vmem:[%s925_s8] ss:$0 sm:$0xff]  ;;  %s446_s8 = sshll.u32 %s682_s6, 4  ;;  %s447_s8 = int_to_ptr.vmem [resolvable:$true] %s446_s8 }
  0x15   :  { %623 = vmatprep.subr.bf16.mxu0 %v678_v4  ;;  %v461_v13 = vld [vmem:[%s926_s9] ss:$0 sm:$0xff]  ;;  %s654_s9 = scalar_lea.vmem %s447_s8, 128  ;;  %p659_p1 = scmp.lt.s32.totalorder %s447_s8, %s447_s8 }
  0x16   :  { %v462_v23 = vld [vmem:[#allocation2] ss:$0 sm:$0xff]  ;;  %p655_p0 = scmp.ne.s32.totalorder %s447_s8, %s654_s9  ;;  %p660_p2 = scmp.lt.s32.totalorder %s654_s9, %s654_s9 }
  0x17   :  { %607 = vmatpush3.bf16.msra.mxu1 %v606_v24 }
  0x18   :  { %608 = vmatprep.subr.bf16.mxu1 %v678_v4  ;;  %625 = vmatpush3.bf16.msra.mxu0 %v624_v42  ;;  %p661_p3 = por %p660_p2, %p659_p1 }
  0x19   :  { %626 = vmatprep.subr.bf16.mxu0 %v678_v4 }
  0x1a   :  { %p662_p4 = pnand %p661_p3, %p655_p0 }
  0x1b   :  { %610 = vmatpush3.bf16.msra.mxu1 %v609_v27 }
  0x1c   :  { %611 = vmatprep.subr.bf16.mxu1 %v678_v4  ;;  %628 = vmatpush3.bf16.msra.mxu0 %v627_v50 }
  0x1d   :  { %629 = vmatprep.subr.bf16.mxu0 %v678_v4 }
  0x1f   :  { %613 = vmatpush3.bf16.msra.mxu1 %v612_v30 }
  0x20   :  { %614 = vmatprep.subr.bf16.mxu1 %v678_v4 }
  0x23   :  { %616 = vmatpush3.bf16.msra.mxu1 %v615_v33 }
  0xe0   :  { %v123_v44 = vpop.f32.mrb[0].mxu0 }
  0xe1   :  { %v124_v45 = vadd.f32 %v454_v43, %v123_v44  ;;  %v513_v46 = vpop.f32.mrb[1].mxu0 }
  0xe3   :  { %v127_v47 = vmax.f32 %v124_v45, 0.0 }
  0xe5   :  { %547 = vmatmul.mubr.f32.vlgmr.msra.gmra.mrb[0].mxu1 %v127_v47 }
 0x1b8   :  { %v217_v54 = vpop.f32.mrb[0].mxu1 }
 0x1b9   :  { %v218_v55 = vadd.f32 %v456_v51, %v217_v54  ;;  %v548_v56 = vpop.f32.mrb[1].mxu1 }
 0x1bb   :  { %v221_v58 = vmax.f32 %v218_v55, 0.0 }
 0x1bd   :  { %566 = vmatmul.mubr.msk.f32.vlgmr.msra.gmra.mrb[2].mxu0 %vm237_vm2, %v221_v58 }
 0x1be   :  { %631 = vmatpush3.bf16.msra.mxu0 %v630_v57  ;;  %584 = vmatprep.mubr.msk.f32.mxu0 %vm679_vm0, %v680_v7 }
 0x1bf   :  { %632 = vmatprep.subr.bf16.mxu0 %v678_v4 }
 0x1c2   :  { %634 = vmatpush3.bf16.msra.mxu0 %v633_v61 }
 0x1c3   :  { %635 = vmatprep.subr.bf16.mxu0 %v678_v4 }
 0x1c6   :  { %637 = vmatpush3.bf16.msra.mxu0 %v636_v0 }
 0x1c7   :  { %638 = vmatprep.subr.bf16.mxu0 %v678_v4 }
 0x1ca   :  { %640 = vmatpush3.bf16.msra.mxu0 %v639_v3 }
 0x1cd   :  { %585 = vmatmul.mubr.msk.f32.vlgmr.msra.gmra.mrb[4].mxu0 %vm237_vm2, %v221_v58 }
 0x290   :  { %v307_v6 = vpop.f32.mrb[2].mxu0 }
 0x291   :  { %v308_v7 = vadd.f32 %v457_v5, %v307_v6  ;;  %v567_v8 = vpop.f32.mrb[3].mxu0 }
 0x293   :  { %v311_v9 = vsel %vm53_vm1, %v308_v7, -inf }
 0x294   :  { %312 = vmax.xlane.f32.xlu0 %v311_v9 }
 0x2a0   :  { %v403_v11 = vpop.f32.mrb[4].mxu0 }
 0x2a1   :  { %v404_v12 = vadd.f32 %v459_v10, %v403_v11  ;;  %v586_v4 = vpop.f32.mrb[5].mxu0 }
 0x2a3   :  { %v407_v14 = vmax.f32 %v404_v12, 0.0 }
 0x2a5   :  { %v415_v15 = vmul.f32 %v461_v13, %v407_v14 }
 0x2a7   :  { %v416_v16 = vsel %vm53_vm1, %v415_v15, 0.0 }
 0x2a8   :  { %417 = vadd.xlane.f32.xlu0 %v416_v16 }
 0x321   :  { %v313_v18 = vpop.xlane.xlu0 %312 }
 0x322   :  { %v314_v19 = vsub.f32 %v308_v7, %v313_v18 }
 0x324   :  { %v315_v20 = vmul.f32 1.442695, %v314_v19 }
 0x326   :  { %648 = vpow2.f32 %v315_v20 }
 0x330   :  { %v649_v21 = vpop.eup %648 }
 0x331   :  { %v317_v22 = vsel %vm53_vm1, %v649_v21, 0.0 }
 0x332   :  { %318 = vadd.xlane.f32.xlu1 %v317_v22 }
 0x335   :  { %v418_v24 = vpop.xlane.xlu0 %417 }
 0x336   :  { %v426_v25 = vadd.f32 %v462_v23, %v418_v24 }
 0x338   :  { %650 = vtanh.f32 %v426_v25 }
 0x342   :  { %v651_v26 = vpop.eup %650 }
 0x343   :  { %435 = vperm.xlu1 %646, %v651_v26  }
 0x3bf   :  { %v319_v27 = vpop.xlane.xlu1 %318 }
 0x3c0   :  { %652 = vrcp.f32 %v319_v27 }
 0x3c3   :  { %v436_v32 = vpop.permute.xlu1 %435 }
 0x3ca   :  { %v653_v30 = vpop.eup %652 }
 0x3cb   :  { %v321_v31 = vmul.f32 %v653_v30, %v649_v21 }
 0x3cd   :  { %v438_v33 = vsel %vm430_vm3, %v436_v32, %v321_v31 }
 0x3ce   :  { %439 = vst.msk [vmem:[#allocation3] sm:$0xff] %vm53_vm1, %v438_v33 }
 0x3cf   :  { %665 = shalt.err (!%p662_p4)
}
 0x3d0   :  { %s666_s1 = scalar_lea.hbm %s928_s11, 128 }
 0x3d1   :  { %p667_p5 = scmp.ne.s32.totalorder %s928_s11, %s666_s1  ;;  %p670_p6 = scmp.lt.u32.totalorder %s666_s1, %s928_s11 }
 0x3d3   :  { %p672_p7 = pnand %p670_p6, %p667_p5 }
 0x3d5   :  { %675 = shalt.err (!%p672_p7)
}
 0x3d6   :  { %449 = dma.vmem_to_hbm [thread:$0]  %s447_s8, 128, %s928_s11, [#allocation4]  }
 0x3d7   :  { %676 = dma.done.wait [#allocation4], 128  }
 0x3d8   :  { %677 = vsyncadd [#allocation4], 4294967168 }
 0x3d9   :  { %453 = vsyncpa [#allocation4], 1 }

</bundles_post_ra>
